<compile_context>
chip_gen: v7x
topology: tpu7x:2x2x1
jax: 0.10.0
libtpu: 0.0.40
codegen_flags: <defaults>
</compile_context>

<pallas_src>
import functools

import jax
import jax.numpy as jnp
from jax.experimental import pallas as pl
from jax.experimental.pallas import tpu as pltpu

_EPS = 1e-5


# ----------------------------------------------------------------------------
# Pallas kernel: fused BN-affine + constant-border pad
# ----------------------------------------------------------------------------

def _bn_pad_kernel(x_ref, scale_ref, shift_ref, pad_ref, o_ref, *, pad_pixels):
    """x_ref: (1, cb, H, W); scale/shift/pad refs: (cb, 1); o_ref: (1, cb, H+2p, W+2p)."""
    p = pad_pixels
    _, cb, h, w = x_ref.shape
    scale = scale_ref[...].reshape(1, cb, 1, 1)
    shift = shift_ref[...].reshape(1, cb, 1, 1)
    y = x_ref[...] * scale + shift                       # folded BN affine (VPU)
    if p > 0:
        pad = pad_ref[...].reshape(1, cb, 1, 1)
        # Fill the whole output block with the per-channel pad value, then
        # overwrite the interior with the BN result: two contiguous stores.
        o_ref[...] = jnp.broadcast_to(pad, o_ref.shape)
        o_ref[:, :, pl.ds(p, h), pl.ds(p, w)] = y
    else:
        o_ref[...] = y


def _pick_channel_block(c, h, w, hp, wp, itemsize, budget_bytes=8 * 1024 * 1024):
    """Largest channel block (divisor of C, multiple of 8 unless == C) whose
    double-buffered input+output tiles fit the VMEM budget."""
    def fits(cb):
        return 2 * cb * (h * w + hp * wp) * itemsize <= budget_bytes

    if fits(c):
        return c
    for cb in range((c // 8) * 8, 0, -8):
        if c % cb == 0 and fits(cb):
            return cb
    return c  # fallback: whole channel dim (vmem_limit_bytes gives headroom)


# ----------------------------------------------------------------------------
# Wrapper: BNAndPadLayer.forward
# ----------------------------------------------------------------------------

def bn_and_pad(x, gamma, beta, running_mean, running_var, *, pad_pixels,
               eps=_EPS, training=False, affine=True):
    """x: (N, C, H, W) float32 -> (N, C, H + 2p, W + 2p) float32."""
    n, c, h, w = x.shape
    p = int(pad_pixels)
    x = x.astype(jnp.float32)

    if not affine:
        gamma = jnp.ones((c,), jnp.float32)
        beta = jnp.zeros((c,), jnp.float32)

    if training:
        # Train-mode BatchNorm normalizes with batch statistics (biased var);
        # the pad values below still use the running statistics (as in PyTorch).
        mean = jnp.mean(x, axis=(0, 2, 3))
        var = jnp.var(x, axis=(0, 2, 3))
    else:
        mean, var = running_mean, running_var

    # Fold BN into per-channel scale / shift (removes a separate elementwise pass).
    scale = gamma / jnp.sqrt(var + eps)
    shift = beta - mean * scale
    pad_vals = beta - running_mean * gamma / jnp.sqrt(running_var + eps)

    hp, wp = h + 2 * p, w + 2 * p
    cb = _pick_channel_block(c, h, w, hp, wp, 4)

    scale2 = scale.reshape(c, 1).astype(jnp.float32)
    shift2 = shift.reshape(c, 1).astype(jnp.float32)
    pad2 = pad_vals.reshape(c, 1).astype(jnp.float32)

    return pl.pallas_call(
        functools.partial(_bn_pad_kernel, pad_pixels=p),
        out_shape=jax.ShapeDtypeStruct((n, c, hp, wp), jnp.float32),
        grid=(n, c // cb),
        in_specs=[
            pl.BlockSpec((1, cb, h, w), lambda i, j: (i, j, 0, 0)),
            pl.BlockSpec((cb, 1), lambda i, j: (j, 0)),
            pl.BlockSpec((cb, 1), lambda i, j: (j, 0)),
            pl.BlockSpec((cb, 1), lambda i, j: (j, 0)),
        ],
        out_specs=pl.BlockSpec((1, cb, hp, wp), lambda i, j: (i, j, 0, 0)),
        compiler_params=pltpu.CompilerParams(
            dimension_semantics=("parallel", "parallel"),
            vmem_limit_bytes=32 * 1024 * 1024,
        ),
    )(x, scale2, shift2, pad2)


# ----------------------------------------------------------------------------
# Pure-JAX reference (mirrors the PyTorch forward exactly)
# ----------------------------------------------------------------------------

def _bn_and_pad_ref(x, gamma, beta, running_mean, running_var, *, pad_pixels,
                    eps=_EPS, training=False):
    if training:
        mean = x.mean(axis=(0, 2, 3))
        var = x.var(axis=(0, 2, 3))
    else:
        mean, var = running_mean, running_var
    y = ((x - mean[None, :, None, None])
         / jnp.sqrt(var[None, :, None, None] + eps)
         * gamma[None, :, None, None] + beta[None, :, None, None])
    p = pad_pixels
    if p > 0:
        pad_vals = beta - running_mean * gamma / jnp.sqrt(running_var + eps)
        y = jnp.pad(y, ((0, 0), (0, 0), (p, p), (p, p)))
        pv = pad_vals[None, :, None, None]
        y = y.at[:, :, :p, :].set(pv)
        y = y.at[:, :, -p:, :].set(pv)
        y = y.at[:, :, :, :p].set(pv)
        y = y.at[:, :, :, -p:].set(pv)
    return y


# ----------------------------------------------------------------------------
# Main
# ----------------------------------------------------------------------------

if __name__ == "__main__":
    key = jax.random.PRNGKey(0)
    kx, kg, kb, km, kv = jax.random.split(key, 5)

    N, C, H, W = 2, 16, 16, 16
    PAD = 1

    x = jax.random.normal(kx, (N, C, H, W), jnp.float32)
    gamma = 1.0 + 0.1 * jax.random.normal(kg, (C,), jnp.float32)
    beta = 0.1 * jax.random.normal(kb, (C,), jnp.float32)
    running_mean = 0.1 * jax.random.normal(km, (C,), jnp.float32)
    running_var = 1.0 + 0.1 * jnp.abs(jax.random.normal(kv, (C,), jnp.float32))

    fwd = jax.jit(bn_and_pad,
                  static_argnames=("pad_pixels", "training", "affine"))

    # Eval mode, pad_pixels=1 (the configuration RepConv uses).
    out = jax.block_until_ready(
        fwd(x, gamma, beta, running_mean, running_var, pad_pixels=PAD))
    ref = _bn_and_pad_ref(x, gamma, beta, running_mean, running_var,
                          pad_pixels=PAD)
    assert out.shape == (N, C, H + 2 * PAD, W + 2 * PAD)
    assert jnp.all(jnp.isfinite(out))
    assert jnp.allclose(out, ref, rtol=1e-5, atol=1e-5)

    # Train mode: batch statistics for normalization, running stats for the pad.
    out_t = jax.block_until_ready(
        fwd(x, gamma, beta, running_mean, running_var, pad_pixels=PAD,
            training=True))
    ref_t = _bn_and_pad_ref(x, gamma, beta, running_mean, running_var,
                            pad_pixels=PAD, training=True)
    assert jnp.allclose(out_t, ref_t, rtol=1e-5, atol=1e-5)

    # pad_pixels = 0 (pure BN) and pad_pixels = 2 on a small odd-sized config.
    x2 = jax.random.normal(jax.random.fold_in(key, 7), (2, 4, 8, 8), jnp.float32)
    g2 = jnp.ones((4,), jnp.float32)
    b2 = 0.05 * jnp.arange(4, dtype=jnp.float32)
    m2 = 0.1 * jnp.ones((4,), jnp.float32)
    v2 = jnp.ones((4,), jnp.float32)

    out0 = jax.block_until_ready(fwd(x2, g2, b2, m2, v2, pad_pixels=0))
    ref0 = _bn_and_pad_ref(x2, g2, b2, m2, v2, pad_pixels=0)
    assert jnp.allclose(out0, ref0, rtol=1e-5, atol=1e-5)

    out2 = jax.block_until_ready(fwd(x2, g2, b2, m2, v2, pad_pixels=2))
    ref2 = _bn_and_pad_ref(x2, g2, b2, m2, v2, pad_pixels=2)
    assert jnp.allclose(out2, ref2, rtol=1e-5, atol=1e-5)

    print("KERNEL_OK")
</pallas_src>

<mosaic_0001>
module attributes {stable_mosaic.version = 11 : i64} {
  func.func @_bn_pad_kernel(%arg0: i32, %arg1: i32, %arg2: memref<1x16x16x16xf32, #tpu.memory_space<vmem>>, %arg3: memref<16x1xf32, #tpu.memory_space<vmem>>, %arg4: memref<16x1xf32, #tpu.memory_space<vmem>>, %arg5: memref<16x1xf32, #tpu.memory_space<vmem>>, %arg6: memref<1x16x18x18xf32, #tpu.memory_space<vmem>>) attributes {dimension_semantics = [#tpu.dimension_semantics<parallel>, #tpu.dimension_semantics<parallel>], iteration_bounds = array<i64: 2, 1>, scalar_prefetch = 0 : i64, scratch_operands = 0 : i64, tpu.core_type = #tpu.core_type<tc>, window_params = [{transform_indices = @transform_0, window_bounds = array<i64: 1, 16, 16, 16>}, {transform_indices = @transform_1, window_bounds = array<i64: 16, 1>}, {transform_indices = @transform_2, window_bounds = array<i64: 16, 1>}, {transform_indices = @transform_3, window_bounds = array<i64: 16, 1>}, {transform_indices = @transform_4, window_bounds = array<i64: 1, 16, 18, 18>}]} {
    %c0 = arith.constant 0 : index
    %c0_0 = arith.constant 0 : index
    %0 = vector.load %arg3[%c0, %c0_0] : memref<16x1xf32, #tpu.memory_space<vmem>>, vector<16x1xf32>
    %1 = vector.shape_cast %0 : vector<16x1xf32> to vector<1x16x1x1xf32>
    %c0_1 = arith.constant 0 : index
    %c0_2 = arith.constant 0 : index
    %2 = vector.load %arg4[%c0_1, %c0_2] : memref<16x1xf32, #tpu.memory_space<vmem>>, vector<16x1xf32>
    %3 = vector.shape_cast %2 : vector<16x1xf32> to vector<1x16x1x1xf32>
    %c0_3 = arith.constant 0 : index
    %c0_4 = arith.constant 0 : index
    %c0_5 = arith.constant 0 : index
    %c0_6 = arith.constant 0 : index
    %4 = vector.load %arg2[%c0_3, %c0_4, %c0_5, %c0_6] : memref<1x16x16x16xf32, #tpu.memory_space<vmem>>, vector<1x16x16x16xf32>
    %5 = vector.broadcast %1 : vector<1x16x1x1xf32> to vector<1x16x16x16xf32>
    %6 = arith.mulf %4, %5 : vector<1x16x16x16xf32>
    %7 = vector.broadcast %3 : vector<1x16x1x1xf32> to vector<1x16x16x16xf32>
    %8 = arith.addf %6, %7 : vector<1x16x16x16xf32>
    %c0_7 = arith.constant 0 : index
    %c0_8 = arith.constant 0 : index
    %9 = vector.load %arg5[%c0_7, %c0_8] : memref<16x1xf32, #tpu.memory_space<vmem>>, vector<16x1xf32>
    %10 = vector.shape_cast %9 : vector<16x1xf32> to vector<1x16x1x1xf32>
    %11 = vector.shape_cast %10 : vector<1x16x1x1xf32> to vector<1x16x1x1xf32>
    %12 = vector.broadcast %11 : vector<1x16x1x1xf32> to vector<1x16x18x18xf32>
    %c0_9 = arith.constant 0 : index
    %c0_10 = arith.constant 0 : index
    %c0_11 = arith.constant 0 : index
    %c0_12 = arith.constant 0 : index
    %13 = vector.load %arg6[%c0_9, %c0_10, %c0_11, %c0_12] : memref<1x16x18x18xf32, #tpu.memory_space<vmem>>, vector<1x16x18x18xf32>
    tpu.vector_store %arg6[%c0_9, %c0_10, %c0_11, %c0_12], %12 {strides = array<i32>} : memref<1x16x18x18xf32, #tpu.memory_space<vmem>>, vector<1x16x18x18xf32>,
    %c0_13 = arith.constant 0 : index
    %c0_14 = arith.constant 0 : index
    %c1 = arith.constant 1 : index
    %c1_15 = arith.constant 1 : index
    %14 = vector.load %arg6[%c0_13, %c0_14, %c1, %c1_15] : memref<1x16x18x18xf32, #tpu.memory_space<vmem>>, vector<1x16x16x16xf32>
    tpu.vector_store %arg6[%c0_13, %c0_14, %c1, %c1_15], %8 {strides = array<i32>} : memref<1x16x18x18xf32, #tpu.memory_space<vmem>>, vector<1x16x16x16xf32>,
    return
  }
  func.func @transform_0(%arg0: i32, %arg1: i32) -> (i32, i32, i32, i32) {
    %c0_i32 = arith.constant 0 : i32
    %c0_i32_0 = arith.constant 0 : i32
    %c0_i32_1 = arith.constant 0 : i32
    return %arg0, %arg1, %c0_i32, %c0_i32_0 : i32, i32, i32, i32
  }
  func.func @transform_1(%arg0: i32, %arg1: i32) -> (i32, i32) {
    %c0_i32 = arith.constant 0 : i32
    %c0_i32_0 = arith.constant 0 : i32
    return %arg1, %c0_i32 : i32, i32
  }
  func.func @transform_2(%arg0: i32, %arg1: i32) -> (i32, i32) {
    %c0_i32 = arith.constant 0 : i32
    %c0_i32_0 = arith.constant 0 : i32
    return %arg1, %c0_i32 : i32, i32
  }
  func.func @transform_3(%arg0: i32, %arg1: i32) -> (i32, i32) {
    %c0_i32 = arith.constant 0 : i32
    %c0_i32_0 = arith.constant 0 : i32
    return %arg1, %c0_i32 : i32, i32
  }
  func.func @transform_4(%arg0: i32, %arg1: i32) -> (i32, i32, i32, i32) {
    %c0_i32 = arith.constant 0 : i32
    %c0_i32_0 = arith.constant 0 : i32
    %c0_i32_1 = arith.constant 0 : i32
    return %arg0, %arg1, %c0_i32, %c0_i32_0 : i32, i32, i32, i32
  }
}

</mosaic_0001>

<bundles_post_ra>
// kernel: bn_and_pad.1
= control target key start
LH: loop header
LB: loop body
LE: loop exit
PB: predicated region body
PF: predicated region fallthrough
CT: control target
= control target key end

     0   :  { %9 = vsyncpa [#allocation3], 0  ;;  %s2283_s0 = inlined_call_operand.hbm [shape: f32[2,16,16,16], index: 0, kind: input, shape index: {}]   ;;  %s2284_s1 = inlined_call_operand.vmem [shape: f32[16,1], index: 1, kind: input, shape index: {}]   ;;  %s2285_s2 = inlined_call_operand.vmem [shape: f32[16,1], index: 2, kind: input, shape index: {}]   ;;  %s2286_s3 = inlined_call_operand.vmem [shape: f32[16,1], index: 3, kind: input, shape index: {}]   ;;  %s2287_s4 = inlined_call_operand.vmem [shape: f32[2,16,18,18], index: 4, kind: output, shape index: {}]  }
   0x1   :  { %11 = vsyncpa [#allocation3 + $0x1], 0  ;;  %s1656_s15 = smov 0   ;;  %s1658_s16 = smov 0  }
   0x2   :  { %s1660_s17 = smov 0   ;;  %s1662_s18 = smov 0  }
   0x3   :  { %s1664_s19 = smov 0   ;;  %s1666_s20 = smov 0  }
   0x4 LB: > { %s1458_s21 = sadd.s32 4294967295, %s1623_s20   ;;  %s29_s22 = sadd.s32 1, %s1619_s19  ;;  %s1623_s20 = sphi %s1666_s20, %s17_s20   ;;  %s1619_s19 = sphi %s1664_s19, %s2295_s19   ;;  %s1615_s18 = sphi %s1662_s18, %s2294_s18   ;;  %s1611_s17 = sphi %s1660_s17, %s2293_s17   ;;  %s1607_s16 = sphi %s1658_s16, %s2292_s16   ;;  %s1603_s15 = sphi %s1656_s15, %s2291_s15  }
   0x5   : > { %p31_p0 = scmp.ge.s32.totalorder %s29_s22, 2  ;;  %s38_s23 = sadd.s32 1, %s1611_s17 }
   0x6   : > { %p45_p1 = scmp.ne.s32.totalorder %s1611_s17, %s1607_s16  ;;  %p46_p2 = scmp.eq.s32.totalorder %s1623_s20, 0 }
   0x7   : > { %s2297_s22 = smov (%p31_p0, %s29_s22), 0  ;;  %p51_p4 = scmp.ne.s32.totalorder %s1607_s16, %s1603_s15 }
   0x8   : > { %p1692_p3 = por %p46_p2, %p45_p1  ;;  %s33_s25 = ssub.s32 %s1619_s19, %s2297_s22 }
   0x9   : > { %p52_p5 = scmp.eq.s32.totalorder %s1458_s21, 0  ;;  %p36_p6 = scmp.eq.s32.totalorder %s33_s25, 0 }
   0xa   : > { %p1481_p8 = scmp.lt.s32.totalorder %s1623_s20, 2  ;;  %s208_s28 = sand.u32 1, %s1611_s17  }
   0xb   : > { %p1699_p7 = por %p52_p5, %p51_p4  ;;  %s1473_s29 = sshll.u32 %s1619_s19, 12 }
   0xc   : > { %s1705_s27 = scalar_select %p36_p6, %s1611_s17, %s38_s23  }
   0xd   : > { %s1465_s30 = sshll.u32 %s208_s28, 8  ;;  %s1712_s7 = scalar_lea.hbm %s2283_s0, %s1473_s29 }
   0xe   : > { %s212_s8 = scalar_lea.vmem [#allocation2], %s1465_s30  ;;  %p1716_p9 = pnand %p1481_p8, %p1692_p3 }
   0xf   : > { %s222_s9 = sshll.u32 %s212_s8, 4  ;;  %s1722_s11 = scalar_lea.sflag [#allocation3], %s208_s28  ;;  %s1720_s9 = int_to_ptr.vmem [resolvable:$true] %s222_s9 }
  0x10   : > { %s1543_s12 = scalar_lea.hbm %s1712_s7, 4096  ;;  %p1545_p11 = pneg %p1716_p9 }
  0x11   : > { %p1544_p10 = scmp.ne.s32.totalorder %s1712_s7, %s1543_s12  ;;  %s1548_s15 = scalar_lea.hbm %s2283_s0, 8192 }
  0x12   : > { %p1549_p0 = scmp.lt.u32.totalorder %s1712_s7, %s2283_s0  ;;  %p1550_p1 = scmp.lt.u32.totalorder %s1548_s15, %s1543_s12 }
  0x13   : > { %p1546_p12 = pnand %p1545_p11, %p1544_p10  ;;  %p1552_p3 = scmp.lt.u32.totalorder %s1543_s12, %s1712_s7 }
  0x14   : > { %p1551_p2 = por %p1550_p1, %p1549_p0 }
  0x15   : > { %p1547_p13 = pneg %p1546_p12 }
  0x16   : > { %p1553_p4 = por %p1552_p3, %p1551_p2 }
  0x18   : > { %p1554_p5 = pnand %p1553_p4, %p1547_p13 }
  0x1a   : > { %1557 = shalt.err (!%p1554_p5)
}
  0x1b   : > { %s1558_s24 = scalar_lea.vmem %s1720_s9, 4096  ;;  %s1625_s25 = smov [#allocation2]  }
  0x1c   : > { %p1559_p6 = scmp.ne.s32.totalorder %s1720_s9, %s1558_s24  ;;  %s1563_s28 = sshll.u32 %s1625_s25, 4  ;;  %s1564_s28 = int_to_ptr.vmem [resolvable:$false] %s1563_s28 }
  0x1d   : > { %s1565_s29 = scalar_lea.vmem %s1564_s28, 8192  ;;  %p1566_p12 = scmp.lt.s32.totalorder %s1720_s9, %s1564_s28 }
  0x1e   : > { %p1561_p8 = pnand %p1559_p6, %p1545_p11  ;;  %p1567_p0 = scmp.lt.s32.totalorder %s1565_s29, %s1558_s24 }
  0x20   : > { %p1562_p10 = pneg %p1561_p8  ;;  %p1568_p1 = por %p1567_p0, %p1566_p12 }
  0x22   : > { %p1569_p2 = pnand %p1568_p1, %p1562_p10 }
  0x24   : > { %1572 = shalt.err (!%p1569_p2)
}
  0x25   : > { %s1626_s30 = smov 128   ;;  %s1627_s5 = smov 8  }
  0x26   : > { %1480 = dma.hbm_to_vmem [thread:$0]  (!%p1716_p9), %s1712_s7, 4096, %s1720_s9, %s1722_s11, %s1626_s30, %s1626_s30, %s1627_s5  }
  0x27   : > { %p1468_p11 = scmp.ge.s32.totalorder %s1623_s20, 1  ;;  %p230_p13 = scmp.lt.s32.totalorder %s1623_s20, 3 }
  0x29   : > { %p231_p3 = pnand %p1468_p11, %p230_p13 }
  0x2a   : > { %s236_s6 = sand.u32 (!%p231_p3), 1, %s1607_s16  }
  0x2b   : > { %234 = sbr.rel (%p231_p3) target bundleno = 414 (0x19e), region = 36  ;;  %s1469_s8 = sshll.u32 (!%p231_p3), %s236_s6, 8 }
  0x2c   : > { %s237_s12 = scalar_lea.sflag (!%p231_p3), [#allocation3], %s236_s6  ;;  %s1753_s13 = scalar_lea.vmem (!%p231_p3), [#allocation2], %s1469_s8 }
  0x32   : > { %1598 = dma.done.wait (%p1699_p7), %s237_s12, 4096  }
  0x33   : > { %1600 = vsyncadd (%p1699_p7), %s237_s12, 4294963200  ;;  %v323_v0 = vlaneseq  ;;  %v1628_v1 = vmov 0   ;;  %v1629_v2 = vmov 1966171168   ;;  %v315_v7 = vld [vmem:[%s2284_s1] sm:$0xff]  ;;  %v316_v8 = vld [vmem:[%s2284_s1 + $0x8] sm:$0xff] }
  0x34   : > { %1535 = vset.pattern.permute.xlu0 %v1628_v1  ;;  %v321_v3 = vunpack.c.l.s4 %v1629_v2  ;;  %1536 = vset.pattern.permute.xlu1 %v1628_v1  ;;  %v319_v11 = vcombine.high %v315_v7, %v315_v7  ;;  %v368_v29 = vcombine.high %v316_v8, %v316_v8  ;;  %v871_v32 = vld [vmem:[%s2286_s3] sm:$0xff]  ;;  %v872_v35 = vld [vmem:[%s2286_s3 + $0x8] sm:$0xff]  ;;  %s1630_s29 = smov 1   ;;  %p305_p7 = scmp.lt.s32.totalorder %s1615_s18, 1  ;;  %vm1101_vm0 = vcmask 146432  }
  0x35   : > { %v324_v4 = vshrl.u32 %v323_v0, 7  ;;  %v1795_v37 = vld [vmem:[%s2285_s2] sm:$0xff]  ;;  %v875_v42 = vcombine.high %v871_v32, %v871_v32  ;;  %vm1104_vm1 = vcmask 140288   ;;  %vm1279_vm2 = vcmask 138248  }
  0x36   : > { %v322_v5 = vunpack.c.0.s8 %v321_v3  ;;  %v421_v55 = vcombine.high %v1795_v37, %v1795_v37  ;;  %s2299_s18 = smov (!%p305_p7, %s1615_s18), 1 }
  0x37   : > { %v1768_v10 = vsub.s32 0, %v324_v4  ;;  %s1474_s30 = smul.u32 384, %s2299_s18 }
  0x38   : > { %v1759_v6 = vsub.s32 %v322_v5, %v324_v4 }
  0x39   : > { %s2021_s18 = scalar_lea.vmem %s2287_s4, %s1474_s30 }
  0x3a   : > { %v326_v9 = vrot.slane %v315_v7, %v1759_v6  ;;  %v375_v12 = vrot.slane %v316_v8, %v1759_v6  ;;  %v333_v20 = vrot.slane %v319_v11, %v1759_v6  ;;  %v382_v36 = vrot.slane %v368_v29, %v1759_v6 }
  0x3b   : > { %v882_v40 = vrot.slane %v871_v32, %v1759_v6  ;;  %v931_v43 = vrot.slane %v872_v35, %v1759_v6  ;;  %v428_v45 = vrot.slane %v1795_v37, %v1759_v6  ;;  %v889_v51 = vrot.slane %v875_v42, %v1759_v6 }
  0x3c   : > { %v342_v13 = vrot.slane %v326_v9, %v1759_v6  ;;  %v334_v14 = vcombine.high %v326_v9, %v326_v9  ;;  %v391_v15 = vrot.slane %v375_v12, %v1759_v6  ;;  %v383_v16 = vcombine.high %v375_v12, %v375_v12 }
  0x3d   : > { %v335_v26 = vcombine.high %v333_v20, %v333_v20  ;;  %v349_v28 = vrot.slane %v333_v20, %v1759_v6  ;;  %v384_v47 = vcombine.high %v382_v36, %v382_v36  ;;  %v1804_v48 = vrot.slane %v882_v40, %v1759_v6 }
  0x3e   : > { %v554_v17 = vrot.slane %v342_v13, %v1768_v10  ;;  %v364_v18 = vcombine.high %v342_v13, %v342_v13  ;;  %v405_v19 = vrot.slane %v383_v16, %v1759_v6  ;;  %v356_v21 = vrot.slane %v334_v14, %v1759_v6 }
  0x3f   : > { %v586_v23 = vrot.slane %v391_v15, %v1768_v10  ;;  %v363_v31 = vrot.slane %v335_v26, %v1759_v6  ;;  %v570_v33 = vrot.slane %v349_v28, %v1768_v10  ;;  %v365_v34 = vcombine.high %v349_v28, %v349_v28 }
  0x40   : > { %616 = vperm.xlu0 %1535, %v554_v17   ;;  %v562_v22 = vrot.slane %v364_v18, %v1768_v10  ;;  %v590_v24 = vrot.slane %v405_v19, %v1768_v10  ;;  %v366_v25 = vcombine.high %v356_v21, %v356_v21  ;;  %v558_v27 = vrot.slane %v356_v21, %v1768_v10 }
  0x41   : > { %v574_v38 = vrot.slane %v363_v31, %v1768_v10  ;;  %v415_v39 = vcombine.high %v405_v19, %v405_v19  ;;  %v413_v41 = vcombine.high %v391_v15, %v391_v15  ;;  %v578_v44 = vrot.slane %v365_v34, %v1768_v10 }
  0x42   : > { %624 = vperm.xlu1 %1536, %v562_v22   ;;  %v566_v30 = vrot.slane %v366_v25, %v1768_v10  ;;  %v367_v46 = vcombine.high %v363_v31, %v363_v31  ;;  %v890_v49 = vcombine.high %v882_v40, %v882_v40  ;;  %v1809_v52 = vrot.slane %v931_v43, %v1759_v6 }
  0x43   : > { %v598_v50 = vrot.slane %v415_v39, %v1768_v10  ;;  %v594_v53 = vrot.slane %v413_v41, %v1768_v10  ;;  %v398_v54 = vrot.slane %v382_v36, %v1759_v6  ;;  %v976_v56 = vrot.slane %v1804_v48, %v1768_v10 }
  0x44   : > { %648 = vperm.xlu0 %1535, %v586_v23   ;;  %v1818_v57 = vrot.slane %v890_v49, %v1759_v6  ;;  %v920_v58 = vcombine.high %v1804_v48, %v1804_v48  ;;  %v1823_v59 = vrot.slane %v889_v51, %v1759_v6  ;;  %v891_v60 = vcombine.high %v889_v51, %v889_v51 }
  0x45   : > { %v582_v61 = vrot.slane %v367_v46, %v1768_v10  ;;  %v412_v62 = vrot.slane %v384_v47, %v1759_v6  ;;  %v436_v63 = vcombine.high %v428_v45, %v428_v45  ;;  %v1008_v0 = vrot.slane %v1809_v52, %v1768_v10  ;;  %v418_v46 = vld [vmem:[%s2285_s2 + $0x8] sm:$0xff] }
  0x46   : > { %652 = vperm.xlu1 %1536, %v590_v24   ;;  %v980_v1 = vrot.slane %v1818_v57, %v1768_v10  ;;  %v1832_v2 = vrot.slane %v920_v58, %v1768_v10  ;;  %v922_v3 = vcombine.high %v1818_v57, %v1818_v57  ;;  %v992_v4 = vrot.slane %v1823_v59, %v1768_v10 }
  0x47   : > { %v602_v5 = vrot.slane %v398_v54, %v1768_v10  ;;  %v1840_v7 = vrot.slane %v891_v60, %v1759_v6  ;;  %v921_v8 = vcombine.high %v1823_v59, %v1823_v59  ;;  %v939_v9 = vcombine.high %v931_v43, %v931_v43 }
  0x48   : > { %620 = vperm.xlu0 %1535, %v558_v27   ;;  %v414_v11 = vcombine.high %v398_v54, %v398_v54  ;;  %v1845_v12 = vrot.slane %v922_v3, %v1768_v10  ;;  %v969_v13 = vcombine.high %v1809_v52, %v1809_v52  ;;  %v924_v14 = vcombine.high %v872_v35, %v872_v35 }
  0x49   : > { %v996_v15 = vrot.slane %v1840_v7, %v1768_v10  ;;  %v1852_v16 = vrot.slane %v921_v8, %v1768_v10  ;;  %v923_v17 = vcombine.high %v1840_v7, %v1840_v7  ;;  %v1857_v18 = vrot.slane %v939_v9, %v1759_v6 }
  0x4a   : > { %628 = vperm.xlu1 %1536, %v566_v30   ;;  %v606_v19 = vrot.slane %v412_v62, %v1768_v10  ;;  %v416_v20 = vcombine.high %v412_v62, %v412_v62  ;;  %v1861_v21 = vrot.slane %v969_v13, %v1768_v10  ;;  %v938_v22 = vrot.slane %v924_v14, %v1759_v6 }
  0x4b   : > { %v444_v23 = vrot.slane %v428_v45, %v1759_v6  ;;  %v1866_v24 = vrot.slane %v923_v17, %v1768_v10  ;;  %v1012_v25 = vrot.slane %v1857_v18, %v1768_v10  ;;  %v971_v26 = vcombine.high %v1857_v18, %v1857_v18  ;;  %v520_v18 = vld [vmem:[%s1753_s13 + $0x8] sm:$0xff] }
  0x4c   : > { %632 = vperm.xlu0 %1535, %v570_v33   ;;  %v610_v27 = vrot.slane %v414_v11, %v1768_v10  ;;  %v1874_v28 = vrot.slane %v938_v22, %v1759_v6  ;;  %v940_v29 = vcombine.high %v938_v22, %v938_v22  ;;  %v458_v30 = vrot.slane %v436_v63, %v1759_v6 }
  0x4d   : > { %v435_v31 = vrot.slane %v421_v55, %v1759_v6  ;;  %v1879_v32 = vrot.slane %v971_v26, %v1768_v10  ;;  %v614_v33 = vrot.slane %v416_v20, %v1768_v10  ;;  %v714_v37 = vrot.slane %v444_v23, %v1768_v10 }
  0x4e   : > { %636 = vperm.xlu1 %1536, %v574_v38   ;;  %v1024_v34 = vrot.slane %v1874_v28, %v1768_v10  ;;  %v1885_v35 = vrot.slane %v940_v29, %v1759_v6  ;;  %v970_v36 = vcombine.high %v1874_v28, %v1874_v28  ;;  %v466_v38 = vcombine.high %v444_v23, %v444_v23 }
  0x4f   : > { %v718_v42 = vrot.slane %v458_v30, %v1768_v10  ;;  %v468_v43 = vcombine.high %v458_v30, %v458_v30  ;;  %v451_v49 = vrot.slane %v435_v31, %v1759_v6  ;;  %v470_v62 = vcombine.high %v418_v46, %v418_v46 }
  0x50   : > { %640 = vperm.xlu0 %1535, %v578_v44   ;;  %v1028_v39 = vrot.slane %v1885_v35, %v1768_v10  ;;  %v1893_v40 = vrot.slane %v970_v36, %v1768_v10  ;;  %v972_v41 = vcombine.high %v1885_v35, %v1885_v35  ;;  %v437_v44 = vcombine.high %v435_v31, %v435_v31 }
  0x51   : > { %v722_v47 = vrot.slane %v466_v38, %v1768_v10  ;;  %v730_v54 = vrot.slane %v451_v49, %v1768_v10  ;;  %v467_v55 = vcombine.high %v451_v49, %v451_v49  ;;  %v484_v9 = vrot.slane %v470_v62, %v1759_v6  ;;  %v521_v49 = vld [vmem:[%s1753_s13 + $0x10] sm:$0xff]  ;;  %v524_v62 = vld [vmem:[%s1753_s13 + $0x28] sm:$0xff] }
  0x52   : > { %660 = vperm.xlu1 %1536, %v598_v50   ;;  %v1899_v45 = vrot.slane %v972_v41, %v1768_v10  ;;  %v726_v50 = vrot.slane %v468_v43, %v1768_v10  ;;  %v465_v51 = vrot.slane %v437_v44, %v1759_v6  ;;  %v536_v43 = vld [vmem:[%s1753_s13 + $0x88] sm:$0xff] }
  0x53   : > { %v738_v63 = vrot.slane %v467_v55, %v1768_v10  ;;  %v500_v22 = vrot.slane %v484_v9, %v1759_v6 }
  0x54   : > { %656 = vperm.xlu0 %1535, %v594_v53   ;;  %v477_v53 = vrot.slane %v418_v46, %v1759_v6  ;;  %v734_v58 = vrot.slane %v465_v51, %v1768_v10  ;;  %v469_v60 = vcombine.high %v465_v51, %v465_v51 }
  0x55   : > { %v516_v29 = vcombine.high %v500_v22, %v500_v22 }
  0x56   : > { %644 = vperm.xlu1 %1536, %v582_v61   ;;  %v485_v61 = vcombine.high %v477_v53, %v477_v53  ;;  %v493_v3 = vrot.slane %v477_v53, %v1759_v6 }
  0x58   : > { %664 = vperm.xlu0 %1535, %v602_v5   ;;  %v742_v5 = vrot.slane %v469_v60, %v1768_v10  ;;  %v507_v8 = vrot.slane %v485_v61, %v1759_v6  ;;  %v746_v11 = vrot.slane %v493_v3, %v1768_v10  ;;  %v515_v13 = vcombine.high %v493_v3, %v493_v3  ;;  %v523_v61 = vld [vmem:[%s1753_s13 + $0x20] sm:$0xff] }
  0x5a   : > { %668 = vperm.xlu1 %1536, %v606_v19   ;;  %v750_v14 = vrot.slane %v507_v8, %v1768_v10  ;;  %v517_v17 = vcombine.high %v507_v8, %v507_v8  ;;  %v486_v19 = vcombine.high %v484_v9, %v484_v9  ;;  %v754_v20 = vrot.slane %v515_v13, %v1768_v10  ;;  %v527_v13 = vld [vmem:[%s1753_s13 + $0x40] sm:$0xff] }
  0x5c   : > { %672 = vperm.xlu0 %1535, %v610_v27   ;;  %v758_v23 = vrot.slane %v517_v17, %v1768_v10  ;;  %v514_v26 = vrot.slane %v486_v19, %v1759_v6  ;;  %v762_v27 = vrot.slane %v500_v22, %v1768_v10 }
  0x5e   : > { %676 = vperm.xlu1 %1536, %v614_v33   ;;  %v766_v30 = vrot.slane %v514_v26, %v1768_v10  ;;  %v518_v31 = vcombine.high %v514_v26, %v514_v26  ;;  %v770_v33 = vrot.slane %v516_v29, %v1768_v10  ;;  %v538_v29 = vld [vmem:[%s1753_s13 + $0x98] sm:$0xff] }
  0x60   : > { %776 = vperm.xlu0 %1535, %v714_v37   ;;  %v774_v36 = vrot.slane %v518_v31, %v1768_v10 }
  0x62   : > { %780 = vperm.xlu1 %1536, %v718_v42   ;;  %v535_v42 = vld [vmem:[%s1753_s13 + $0x80] sm:$0xff] }
  0x64   : > { %784 = vperm.xlu0 %1535, %v722_v47  }
  0x66   : > { %788 = vperm.xlu1 %1536, %v726_v50   ;;  %v522_v50 = vld [vmem:[%s1753_s13 + $0x18] sm:$0xff] }
  0x68   : > { %792 = vperm.xlu0 %1535, %v730_v54  }
  0x6a   : > { %796 = vperm.xlu1 %1536, %v734_v58  }
  0x6c   : > { %800 = vperm.xlu0 %1535, %v738_v63  }
  0x6e   : > { %804 = vperm.xlu1 %1536, %v742_v5  }
  0x70   : > { %808 = vperm.xlu0 %1535, %v746_v11  }
  0x72   : > { %812 = vperm.xlu1 %1536, %v750_v14   ;;  %v528_v14 = vld [vmem:[%s1753_s13 + $0x48] sm:$0xff] }
  0x74   : > { %816 = vperm.xlu0 %1535, %v754_v20  }
  0x76   : > { %820 = vperm.xlu1 %1536, %v758_v23  }
  0x78   : > { %824 = vperm.xlu0 %1535, %v762_v27   ;;  %v537_v27 = vld [vmem:[%s1753_s13 + $0x90] sm:$0xff] }
  0x7a   : > { %828 = vperm.xlu1 %1536, %v766_v30  }
  0x7c   : > { %832 = vperm.xlu0 %1535, %v770_v33  }
  0x7e   : > { %836 = vperm.xlu1 %1536, %v774_v36  }
  0x80   : > { %1038 = vperm.xlu0 %1535, %v976_v56  }
  0x82   : > { %1042 = vperm.xlu1 %1536, %v980_v1  }
  0x84   : > { %1046 = vperm.xlu0 %1535, %v1832_v2  }
  0x86   : > { %1050 = vperm.xlu1 %1536, %v1845_v12  }
  0x88   : > { %1054 = vperm.xlu0 %1535, %v992_v4  }
  0x8a   : > { %1058 = vperm.xlu1 %1536, %v996_v15  }
  0x8c   : > { %1062 = vperm.xlu0 %1535, %v1852_v16   ;;  %v519_v16 = vld [vmem:[%s1753_s13] sm:$0xff] }
  0x8e   : > { %1066 = vperm.xlu1 %1536, %v1866_v24  }
  0x90   : > { %1070 = vperm.xlu0 %1535, %v1008_v0  }
  0x92   : > { %1074 = vperm.xlu1 %1536, %v1012_v25  }
  0x94   : > { %1078 = vperm.xlu0 %1535, %v1861_v21  }
  0x96   : > { %1082 = vperm.xlu1 %1536, %v1879_v32  }
  0x98   : > { %1086 = vperm.xlu0 %1535, %v1024_v34  }
  0x9a   : > { %1090 = vperm.xlu1 %1536, %v1028_v39  }
  0x9c   : > { %1094 = vperm.xlu0 %1535, %v1893_v40  }
  0x9e   : > { %1098 = vperm.xlu1 %1536, %v1899_v45  }
  0xbf   : > { %v617_v6 = vpop.permute.xlu0 %616 }
  0xc0   : > { %v679_v25 = vmul.f32 %v617_v6, %v519_v16  ;;  %v680_v28 = vmul.f32 %v617_v6, %v520_v18 }
  0xc1   : > { %v625_v48 = vpop.permute.xlu1 %624 }
  0xc2   : > { %v683_v9 = vmul.f32 %v625_v48, %v523_v61  ;;  %v684_v11 = vmul.f32 %v625_v48, %v524_v62 }
  0xc3   : > { %v649_v52 = vpop.permute.xlu0 %648 }
  0xc4   : > { %v695_v46 = vmul.f32 %v649_v52, %v535_v42  ;;  %v696_v47 = vmul.f32 %v649_v52, %v536_v43  ;;  %v539_v52 = vld [vmem:[%s1753_s13 + $0xa0] sm:$0xff]  ;;  %v525_v43 = vld [vmem:[%s1753_s13 + $0x30] sm:$0xff] }
  0xc5   : > { %v1958_v56 = vpop.permute.xlu1 %652 }
  0xc6   : > { %v697_v6 = vmul.f32 %v1958_v56, %v537_v27  ;;  %v698_v48 = vmul.f32 %v1958_v56, %v538_v29  ;;  %v546_v29 = vld [vmem:[%s1753_s13 + $0xd8] sm:$0xff] }
  0xc7   : > { %v621_v57 = vpop.permute.xlu0 %620 }
  0xc8   : > { %v681_v58 = vmul.f32 %v621_v57, %v521_v49  ;;  %v682_v60 = vmul.f32 %v621_v57, %v522_v50  ;;  %v540_v57 = vld [vmem:[%s1753_s13 + $0xa8] sm:$0xff] }
  0xc9   : > { %v1960_v59 = vpop.permute.xlu1 %628 }
  0xcb   : > { %v633_v0 = vpop.permute.xlu0 %632 }
  0xcc   : > { %v687_v23 = vmul.f32 %v633_v0, %v527_v13  ;;  %v688_v26 = vmul.f32 %v633_v0, %v528_v14 }
  0xcd   : > { %v1962_v1 = vpop.permute.xlu1 %636 }
  0xcf   : > { %v1964_v2 = vpop.permute.xlu0 %640 }
  0xd1   : > { %v1966_v10 = vpop.permute.xlu1 %660 }
  0xd3   : > { %v1968_v4 = vpop.permute.xlu0 %656 }
  0xd5   : > { %v1970_v7 = vpop.permute.xlu1 %644 }
  0xd7   : > { %v1972_v12 = vpop.permute.xlu0 %664 }
  0xd9   : > { %v1974_v15 = vpop.permute.xlu1 %668 }
  0xdb   : > { %v1978_v21 = vpop.permute.xlu0 %672 }
  0xdd   : > { %v1980_v24 = vpop.permute.xlu1 %676 }
  0xdf   : > { %v777_v32 = vpop.permute.xlu0 %776 }
  0xe0   : > { %v839_v34 = vadd.f32 %v777_v32, %v679_v25  ;;  %v840_v35 = vadd.f32 %v777_v32, %v680_v28  ;;  %v699_v25 = vmul.f32 %v1968_v4, %v539_v52  ;;  %v700_v28 = vmul.f32 %v1968_v4, %v540_v57  ;;  %v543_v32 = vld [vmem:[%s1753_s13 + $0xc0] sm:$0xff]  ;;  %v548_v57 = vld [vmem:[%s1753_s13 + $0xe8] sm:$0xff] }
  0xe1   : > { %v781_v37 = vpop.permute.xlu1 %780  ;;  %v706_v52 = vmul.f32 %v1974_v15, %v546_v29 }
  0xe2   : > { %1183 = vrot.lane.b32.xlu0 %v839_v34, %s1630_s29  ;;  %1185 = vrot.lane.b32.xlu1 %v840_v35, %s1630_s29  ;;  %v841_v3 = vadd.f32 %v781_v37, %v681_v58  ;;  %v842_v5 = vadd.f32 %v781_v37, %v682_v60  ;;  %v544_v34 = vld [vmem:[%s1753_s13 + $0xc8] sm:$0xff] }
  0xe3   : > { %v785_v38 = vpop.permute.xlu0 %784  ;;  %v704_v42 = vmul.f32 %v1972_v12, %v544_v34 }
  0xe4   : > { %v843_v19 = vadd.f32 %v785_v38, %v683_v9  ;;  %v844_v20 = vadd.f32 %v785_v38, %v684_v11 }
  0xe5   : > { %v1984_v39 = vpop.permute.xlu1 %788 }
  0xe7   : > { %v793_v40 = vpop.permute.xlu0 %792 }
  0xe8   : > { %v847_v31 = vadd.f32 %v793_v40, %v687_v23  ;;  %v848_v33 = vadd.f32 %v793_v40, %v688_v26  ;;  %v703_v40 = vmul.f32 %v1972_v12, %v543_v32 }
  0xe9   : > { %v1986_v41 = vpop.permute.xlu1 %796 }
  0xeb   : > { %v1990_v44 = vpop.permute.xlu0 %800 }
  0xed   : > { %v1992_v45 = vpop.permute.xlu1 %804 }
  0xef   : > { %v809_v51 = vpop.permute.xlu0 %808 }
  0xf0   : > { %v855_v53 = vadd.f32 %v809_v51, %v695_v46  ;;  %v856_v54 = vadd.f32 %v809_v51, %v696_v47  ;;  %v526_v46 = vld [vmem:[%s1753_s13 + $0x38] sm:$0xff]  ;;  %v685_v51 = vmul.f32 %v1960_v59, %v525_v43 }
  0xf1   : > { %v813_v55 = vpop.permute.xlu1 %812 }
  0xf2   : > { %1215 = vrot.lane.b32.xlu0 %v855_v53, %s1630_s29  ;;  %1217 = vrot.lane.b32.xlu1 %v856_v54, %s1630_s29  ;;  %v857_v16 = vadd.f32 %v813_v55, %v697_v6  ;;  %v858_v18 = vadd.f32 %v813_v55, %v698_v48  ;;  %v686_v53 = vmul.f32 %v1960_v59, %v526_v46  ;;  %v529_v54 = vld [vmem:[%s1753_s13 + $0x50] sm:$0xff]  ;;  %v530_v55 = vld [vmem:[%s1753_s13 + $0x58] sm:$0xff] }
  0xf3   : > { %v817_v63 = vpop.permute.xlu0 %816  ;;  %v845_v59 = vadd.f32 %v1984_v39, %v685_v51  ;;  %v689_v62 = vmul.f32 %v1962_v1, %v529_v54 }
  0xf4   : > { %v859_v37 = vadd.f32 %v817_v63, %v699_v25  ;;  %v860_v4 = vadd.f32 %v817_v63, %v700_v28  ;;  %v846_v60 = vadd.f32 %v1984_v39, %v686_v53  ;;  %v690_v63 = vmul.f32 %v1962_v1, %v530_v55  ;;  %v531_v39 = vld [vmem:[%s1753_s13 + $0x60] sm:$0xff]  ;;  %v534_v28 = vld [vmem:[%s1753_s13 + $0x78] sm:$0xff] }
  0xf5   : > { %v2001_v8 = vpop.permute.xlu1 %820  ;;  %v849_v1 = vadd.f32 %v1986_v41, %v689_v62  ;;  %v691_v13 = vmul.f32 %v1964_v2, %v531_v39  ;;  %v708_v25 = vmul.f32 %v1978_v21, %v548_v57 }
  0xf6   : > { %1189 = vrot.lane.b32.xlu1 %v842_v5, %s1630_s29  ;;  %1187 = vrot.lane.b32.xlu0 %v841_v3, %s1630_s29  ;;  %v532_v3 = vld [vmem:[%s1753_s13 + $0x68] sm:$0xff]  ;;  %v850_v9 = vadd.f32 %v1986_v41, %v690_v63  ;;  %v541_v41 = vld [vmem:[%s1753_s13 + $0xb0] sm:$0xff] }
  0xf7   : > { %v825_v17 = vpop.permute.xlu0 %824  ;;  %v692_v14 = vmul.f32 %v1964_v2, %v532_v3  ;;  %v851_v2 = vadd.f32 %v1990_v44, %v691_v13  ;;  %v701_v26 = vmul.f32 %v1966_v10, %v541_v41 }
  0xf8   : > { %v863_v49 = vadd.f32 %v825_v17, %v703_v40  ;;  %v864_v12 = vadd.f32 %v825_v17, %v704_v42  ;;  %v542_v17 = vld [vmem:[%s1753_s13 + $0xb8] sm:$0xff] }
  0xf9   : > { %v2008_v22 = vpop.permute.xlu1 %828  ;;  %v702_v27 = vmul.f32 %v1966_v10, %v542_v17  ;;  %v861_v10 = vadd.f32 %v2001_v8, %v701_v26 }
  0xfa   : > { %1193 = vrot.lane.b32.xlu1 %v844_v20, %s1630_s29  ;;  %1191 = vrot.lane.b32.xlu0 %v843_v19, %s1630_s29  ;;  %v852_v20 = vadd.f32 %v1990_v44, %v692_v14  ;;  %v545_v44 = vld [vmem:[%s1753_s13 + $0xd0] sm:$0xff] }
  0xfb   : > { %v2014_v30 = vpop.permute.xlu0 %832  ;;  %v705_v48 = vmul.f32 %v1974_v15, %v545_v44 }
  0xfc   : > { %v868_v34 = vadd.f32 %v2014_v30, %v708_v25 }
  0xfd   : > { %v2016_v36 = vpop.permute.xlu1 %836  ;;  %v865_v15 = vadd.f32 %v2008_v22, %v705_v48 }
  0xfe   : > { %1201 = vrot.lane.b32.xlu1 %v848_v33, %s1630_s29  ;;  %1199 = vrot.lane.b32.xlu0 %v847_v31, %s1630_s29  ;;  %v862_v33 = vadd.f32 %v2001_v8, %v702_v27  ;;  %v547_v8 = vld [vmem:[%s1753_s13 + $0xe0] sm:$0xff] }
  0xff   : > { %v1039_v0 = vpop.permute.xlu0 %1038 }
 0x100   : > { %1102 = vst.msk [vmem:[%s2021_s18] sm:$0xff] %vm1101_vm0, %v1039_v0  ;;  %1103 = vst.msk [vmem:[%s2021_s18 + $0x8] sm:$0xff] %vm1101_vm0, %v1039_v0 }
 0x101   : > { %1105 = vst.msk [vmem:[%s2021_s18 + $0x10] sm:$0x3] %vm1104_vm1, %v1039_v0  ;;  %v1043_v56 = vpop.permute.xlu1 %1042 }
 0x102   : > { %1106 = vst.msk [vmem:[%s2021_s18 + $0x18] sm:$0xff] %vm1101_vm0, %v1043_v56  ;;  %1107 = vst.msk [vmem:[%s2021_s18 + $0x20] sm:$0xff] %vm1101_vm0, %v1043_v56  ;;  %1221 = vrot.lane.b32.xlu1 %v858_v18, %s1630_s29  ;;  %1219 = vrot.lane.b32.xlu0 %v857_v16, %s1630_s29  ;;  %v866_v16 = vadd.f32 %v2008_v22, %v706_v52 }
 0x103   : > { %1108 = vst.msk [vmem:[%s2021_s18 + $0x28] sm:$0x3] %vm1104_vm1, %v1043_v56  ;;  %v1047_v35 = vpop.permute.xlu0 %1046  ;;  %v707_v56 = vmul.f32 %v1978_v21, %v547_v8  ;;  %v533_v22 = vld [vmem:[%s1753_s13 + $0x70] sm:$0xff]  ;;  %v694_v21 = vmul.f32 %v1970_v7, %v534_v28 }
 0x104   : > { %1109 = vst.msk [vmem:[%s2021_s18 + $0x30] sm:$0xff] %vm1101_vm0, %v1047_v35  ;;  %1110 = vst.msk [vmem:[%s2021_s18 + $0x38] sm:$0xff] %vm1101_vm0, %v1047_v35 }
 0x105   : > { %1111 = vst.msk [vmem:[%s2021_s18 + $0x40] sm:$0x3] %vm1104_vm1, %v1047_v35  ;;  %v1051_v38 = vpop.permute.xlu1 %1050  ;;  %v867_v32 = vadd.f32 %v2014_v30, %v707_v56  ;;  %v693_v35 = vmul.f32 %v1970_v7, %v533_v22  ;;  %v854_v40 = vadd.f32 %v1992_v45, %v694_v21 }
 0x106   : > { %1112 = vst.msk [vmem:[%s2021_s18 + $0x48] sm:$0xff] %vm1101_vm0, %v1051_v38  ;;  %1113 = vst.msk [vmem:[%s2021_s18 + $0x50] sm:$0xff] %vm1101_vm0, %v1051_v38  ;;  %1225 = vrot.lane.b32.xlu1 %v860_v4, %s1630_s29  ;;  %1223 = vrot.lane.b32.xlu0 %v859_v37, %s1630_s29 }
 0x107   : > { %1114 = vst.msk [vmem:[%s2021_s18 + $0x58] sm:$0x3] %vm1104_vm1, %v1051_v38  ;;  %v1055_v47 = vpop.permute.xlu0 %1054  ;;  %v549_v37 = vld [vmem:[%s1753_s13 + $0xf0] sm:$0xff]  ;;  %v550_v4 = vld [vmem:[%s1753_s13 + $0xf8] sm:$0xff]  ;;  %v853_v38 = vadd.f32 %v1992_v45, %v693_v35 }
 0x108   : > { %1115 = vst.msk [vmem:[%s2021_s18 + $0x60] sm:$0xff] %vm1101_vm0, %v1055_v47  ;;  %1116 = vst.msk [vmem:[%s2021_s18 + $0x68] sm:$0xff] %vm1101_vm0, %v1055_v47  ;;  %v709_v42 = vmul.f32 %v1980_v24, %v549_v37  ;;  %v710_v30 = vmul.f32 %v1980_v24, %v550_v4 }
 0x109   : > { %1117 = vst.msk [vmem:[%s2021_s18 + $0x70] sm:$0x3] %vm1104_vm1, %v1055_v47  ;;  %v1059_v50 = vpop.permute.xlu1 %1058 }
 0x10a   : > { %1118 = vst.msk [vmem:[%s2021_s18 + $0x78] sm:$0xff] %vm1101_vm0, %v1059_v50  ;;  %1119 = vst.msk [vmem:[%s2021_s18 + $0x80] sm:$0xff] %vm1101_vm0, %v1059_v50  ;;  %1233 = vrot.lane.b32.xlu1 %v864_v12, %s1630_s29  ;;  %1231 = vrot.lane.b32.xlu0 %v863_v49, %s1630_s29  ;;  %v869_v7 = vadd.f32 %v2016_v36, %v709_v42  ;;  %v870_v43 = vadd.f32 %v2016_v36, %v710_v30 }
 0x10b   : > { %1120 = vst.msk [vmem:[%s2021_s18 + $0x88] sm:$0x3] %vm1104_vm1, %v1059_v50  ;;  %v1063_v58 = vpop.permute.xlu0 %1062 }
 0x10c   : > { %1121 = vst.msk [vmem:[%s2021_s18 + $0x90] sm:$0xff] %vm1101_vm0, %v1063_v58  ;;  %1122 = vst.msk [vmem:[%s2021_s18 + $0x98] sm:$0xff] %vm1101_vm0, %v1063_v58 }
 0x10d   : > { %1123 = vst.msk [vmem:[%s2021_s18 + $0xa0] sm:$0x3] %vm1104_vm1, %v1063_v58  ;;  %v1067_v61 = vpop.permute.xlu1 %1066 }
 0x10e   : > { %1124 = vst.msk [vmem:[%s2021_s18 + $0xa8] sm:$0xff] %vm1101_vm0, %v1067_v61  ;;  %1125 = vst.msk [vmem:[%s2021_s18 + $0xb0] sm:$0xff] %vm1101_vm0, %v1067_v61  ;;  %1197 = vrot.lane.b32.xlu1 %v846_v60, %s1630_s29  ;;  %1195 = vrot.lane.b32.xlu0 %v845_v59, %s1630_s29 }
 0x10f   : > { %1126 = vst.msk [vmem:[%s2021_s18 + $0xb8] sm:$0x3] %vm1104_vm1, %v1067_v61  ;;  %v1071_v5 = vpop.permute.xlu0 %1070 }
 0x110   : > { %1127 = vst.msk [vmem:[%s2021_s18 + $0xc0] sm:$0xff] %vm1101_vm0, %v1071_v5  ;;  %1128 = vst.msk [vmem:[%s2021_s18 + $0xc8] sm:$0xff] %vm1101_vm0, %v1071_v5 }
 0x111   : > { %1129 = vst.msk [vmem:[%s2021_s18 + $0xd0] sm:$0x3] %vm1104_vm1, %v1071_v5  ;;  %v1075_v11 = vpop.permute.xlu1 %1074 }
 0x112   : > { %1130 = vst.msk [vmem:[%s2021_s18 + $0xd8] sm:$0xff] %vm1101_vm0, %v1075_v11  ;;  %1131 = vst.msk [vmem:[%s2021_s18 + $0xe0] sm:$0xff] %vm1101_vm0, %v1075_v11  ;;  %1205 = vrot.lane.b32.xlu1 %v850_v9, %s1630_s29  ;;  %1203 = vrot.lane.b32.xlu0 %v849_v1, %s1630_s29 }
 0x113   : > { %1132 = vst.msk [vmem:[%s2021_s18 + $0xe8] sm:$0x3] %vm1104_vm1, %v1075_v11  ;;  %v1079_v19 = vpop.permute.xlu0 %1078 }
 0x114   : > { %1133 = vst.msk [vmem:[%s2021_s18 + $0xf0] sm:$0xff] %vm1101_vm0, %v1079_v19  ;;  %1134 = vst.msk [vmem:[%s2021_s18 + $0xf8] sm:$0xff] %vm1101_vm0, %v1079_v19 }
 0x115   : > { %1135 = vst.msk [vmem:[%s2021_s18 + $0x100] sm:$0x3] %vm1104_vm1, %v1079_v19  ;;  %v1083_v23 = vpop.permute.xlu1 %1082 }
 0x116   : > { %1136 = vst.msk [vmem:[%s2021_s18 + $0x108] sm:$0xff] %vm1101_vm0, %v1083_v23  ;;  %1137 = vst.msk [vmem:[%s2021_s18 + $0x110] sm:$0xff] %vm1101_vm0, %v1083_v23  ;;  %1209 = vrot.lane.b32.xlu1 %v852_v20, %s1630_s29  ;;  %1207 = vrot.lane.b32.xlu0 %v851_v2, %s1630_s29 }
 0x117   : > { %1138 = vst.msk [vmem:[%s2021_s18 + $0x118] sm:$0x3] %vm1104_vm1, %v1083_v23  ;;  %v1087_v31 = vpop.permute.xlu0 %1086 }
 0x118   : > { %1139 = vst.msk [vmem:[%s2021_s18 + $0x120] sm:$0xff] %vm1101_vm0, %v1087_v31  ;;  %1140 = vst.msk [vmem:[%s2021_s18 + $0x128] sm:$0xff] %vm1101_vm0, %v1087_v31 }
 0x119   : > { %1141 = vst.msk [vmem:[%s2021_s18 + $0x130] sm:$0x3] %vm1104_vm1, %v1087_v31  ;;  %v1091_v6 = vpop.permute.xlu1 %1090 }
 0x11a   : > { %1142 = vst.msk [vmem:[%s2021_s18 + $0x138] sm:$0xff] %vm1101_vm0, %v1091_v6  ;;  %1143 = vst.msk [vmem:[%s2021_s18 + $0x140] sm:$0xff] %vm1101_vm0, %v1091_v6  ;;  %1229 = vrot.lane.b32.xlu1 %v862_v33, %s1630_s29  ;;  %1227 = vrot.lane.b32.xlu0 %v861_v10, %s1630_s29 }
 0x11b   : > { %1144 = vst.msk [vmem:[%s2021_s18 + $0x148] sm:$0x3] %vm1104_vm1, %v1091_v6  ;;  %v1095_v0 = vpop.permute.xlu0 %1094 }
 0x11c   : > { %1145 = vst.msk [vmem:[%s2021_s18 + $0x150] sm:$0xff] %vm1101_vm0, %v1095_v0  ;;  %1146 = vst.msk [vmem:[%s2021_s18 + $0x158] sm:$0xff] %vm1101_vm0, %v1095_v0 }
 0x11d   : > { %1147 = vst.msk [vmem:[%s2021_s18 + $0x160] sm:$0x3] %vm1104_vm1, %v1095_v0  ;;  %v1099_v18 = vpop.permute.xlu1 %1098 }
 0x11e   : > { %1148 = vst.msk [vmem:[%s2021_s18 + $0x168] sm:$0xff] %vm1101_vm0, %v1099_v18  ;;  %1149 = vst.msk [vmem:[%s2021_s18 + $0x170] sm:$0xff] %vm1101_vm0, %v1099_v18  ;;  %1237 = vrot.lane.b32.xlu1 %v866_v16, %s1630_s29  ;;  %1235 = vrot.lane.b32.xlu0 %v865_v15, %s1630_s29 }
 0x11f   : > { %1150 = vst.msk [vmem:[%s2021_s18 + $0x178] sm:$0x3] %vm1104_vm1, %v1099_v18 }
 0x122   : > { %1241 = vrot.lane.b32.xlu1 %v868_v34, %s1630_s29  ;;  %1239 = vrot.lane.b32.xlu0 %v867_v32, %s1630_s29 }
 0x126   : > { %1213 = vrot.lane.b32.xlu1 %v854_v40, %s1630_s29  ;;  %1211 = vrot.lane.b32.xlu0 %v853_v38, %s1630_s29 }
 0x12a   : > { %1245 = vrot.lane.b32.xlu1 %v870_v43, %s1630_s29  ;;  %1243 = vrot.lane.b32.xlu0 %v869_v7, %s1630_s29 }
 0x154   : > { %v1184_v45 = vpop.permute.xlu0 %1183  ;;  %v1186_v46 = vpop.permute.xlu1 %1185 }
 0x155   : > { %1280 = vst.msk [vmem:[%s2021_s18 + $0x1] sm:$0xff] %vm1279_vm2, %v1184_v45  ;;  %1281 = vst.msk [vmem:[%s2021_s18 + $0x9] sm:$0xff] %vm1279_vm2, %v1186_v46 }
 0x164   : > { %v1216_v24 = vpop.permute.xlu0 %1215  ;;  %v1218_v47 = vpop.permute.xlu1 %1217 }
 0x165   : > { %1296 = vst.msk [vmem:[%s2021_s18 + $0xc1] sm:$0xff] %vm1279_vm2, %v1216_v24  ;;  %1297 = vst.msk [vmem:[%s2021_s18 + $0xc9] sm:$0xff] %vm1279_vm2, %v1218_v47 }
 0x168   : > { %v1188_v36 = vpop.permute.xlu0 %1187  ;;  %v1190_v49 = vpop.permute.xlu1 %1189 }
 0x169   : > { %1282 = vst.msk [vmem:[%s2021_s18 + $0x19] sm:$0xff] %vm1279_vm2, %v1188_v36  ;;  %1283 = vst.msk [vmem:[%s2021_s18 + $0x21] sm:$0xff] %vm1279_vm2, %v1190_v49 }
 0x16c   : > { %v1192_v12 = vpop.permute.xlu0 %1191  ;;  %v1194_v50 = vpop.permute.xlu1 %1193 }
 0x16d   : > { %1284 = vst.msk [vmem:[%s2021_s18 + $0x31] sm:$0xff] %vm1279_vm2, %v1192_v12  ;;  %1285 = vst.msk [vmem:[%s2021_s18 + $0x39] sm:$0xff] %vm1279_vm2, %v1194_v50 }
 0x170   : > { %v1200_v51 = vpop.permute.xlu0 %1199  ;;  %v1202_v53 = vpop.permute.xlu1 %1201 }
 0x171   : > { %1288 = vst.msk [vmem:[%s2021_s18 + $0x61] sm:$0xff] %vm1279_vm2, %v1200_v51  ;;  %1289 = vst.msk [vmem:[%s2021_s18 + $0x69] sm:$0xff] %vm1279_vm2, %v1202_v53 }
 0x174   : > { %v1220_v54 = vpop.permute.xlu0 %1219  ;;  %v1222_v55 = vpop.permute.xlu1 %1221 }
 0x175   : > { %1298 = vst.msk [vmem:[%s2021_s18 + $0xd9] sm:$0xff] %vm1279_vm2, %v1220_v54  ;;  %1299 = vst.msk [vmem:[%s2021_s18 + $0xe1] sm:$0xff] %vm1279_vm2, %v1222_v55 }
 0x178   : > { %v1224_v58 = vpop.permute.xlu0 %1223  ;;  %v1226_v59 = vpop.permute.xlu1 %1225 }
 0x179   : > { %1300 = vst.msk [vmem:[%s2021_s18 + $0xf1] sm:$0xff] %vm1279_vm2, %v1224_v58  ;;  %1301 = vst.msk [vmem:[%s2021_s18 + $0xf9] sm:$0xff] %vm1279_vm2, %v1226_v59 }
 0x17c   : > { %v1232_v60 = vpop.permute.xlu0 %1231  ;;  %v1234_v61 = vpop.permute.xlu1 %1233 }
 0x17d   : > { %1304 = vst.msk [vmem:[%s2021_s18 + $0x121] sm:$0xff] %vm1279_vm2, %v1232_v60  ;;  %1305 = vst.msk [vmem:[%s2021_s18 + $0x129] sm:$0xff] %vm1279_vm2, %v1234_v61 }
 0x180   : > { %v1196_v62 = vpop.permute.xlu0 %1195  ;;  %v1198_v63 = vpop.permute.xlu1 %1197 }
 0x181   : > { %1286 = vst.msk [vmem:[%s2021_s18 + $0x49] sm:$0xff] %vm1279_vm2, %v1196_v62  ;;  %1287 = vst.msk [vmem:[%s2021_s18 + $0x51] sm:$0xff] %vm1279_vm2, %v1198_v63 }
 0x184   : > { %v1204_v39 = vpop.permute.xlu0 %1203  ;;  %v1206_v3 = vpop.permute.xlu1 %1205 }
 0x185   : > { %1290 = vst.msk [vmem:[%s2021_s18 + $0x79] sm:$0xff] %vm1279_vm2, %v1204_v39  ;;  %1291 = vst.msk [vmem:[%s2021_s18 + $0x81] sm:$0xff] %vm1279_vm2, %v1206_v3 }
 0x188   : > { %v1208_v5 = vpop.permute.xlu0 %1207  ;;  %v1210_v1 = vpop.permute.xlu1 %1209 }
 0x189   : > { %1292 = vst.msk [vmem:[%s2021_s18 + $0x91] sm:$0xff] %vm1279_vm2, %v1208_v5  ;;  %1293 = vst.msk [vmem:[%s2021_s18 + $0x99] sm:$0xff] %vm1279_vm2, %v1210_v1 }
 0x18c   : > { %v1228_v9 = vpop.permute.xlu0 %1227  ;;  %v1230_v11 = vpop.permute.xlu1 %1229 }
 0x18d   : > { %1302 = vst.msk [vmem:[%s2021_s18 + $0x109] sm:$0xff] %vm1279_vm2, %v1228_v9  ;;  %1303 = vst.msk [vmem:[%s2021_s18 + $0x111] sm:$0xff] %vm1279_vm2, %v1230_v11 }
 0x190   : > { %v1236_v13 = vpop.permute.xlu0 %1235  ;;  %v1238_v14 = vpop.permute.xlu1 %1237 }
 0x191   : > { %1306 = vst.msk [vmem:[%s2021_s18 + $0x139] sm:$0xff] %vm1279_vm2, %v1236_v13  ;;  %1307 = vst.msk [vmem:[%s2021_s18 + $0x141] sm:$0xff] %vm1279_vm2, %v1238_v14 }
 0x194   : > { %v1240_v41 = vpop.permute.xlu0 %1239  ;;  %v1242_v17 = vpop.permute.xlu1 %1241 }
 0x195   : > { %1308 = vst.msk [vmem:[%s2021_s18 + $0x151] sm:$0xff] %vm1279_vm2, %v1240_v41  ;;  %1309 = vst.msk [vmem:[%s2021_s18 + $0x159] sm:$0xff] %vm1279_vm2, %v1242_v17 }
 0x198   : > { %v1212_v19 = vpop.permute.xlu0 %1211  ;;  %v1214_v2 = vpop.permute.xlu1 %1213 }
 0x199   : > { %1294 = vst.msk [vmem:[%s2021_s18 + $0xa9] sm:$0xff] %vm1279_vm2, %v1212_v19  ;;  %1295 = vst.msk [vmem:[%s2021_s18 + $0xb1] sm:$0xff] %vm1279_vm2, %v1214_v2 }
 0x19c   : > { %v1244_v20 = vpop.permute.xlu0 %1243  ;;  %v1246_v23 = vpop.permute.xlu1 %1245 }
 0x19d   : > { %1310 = vst.msk [vmem:[%s2021_s18 + $0x169] sm:$0xff] %vm1279_vm2, %v1244_v20  ;;  %1311 = vst.msk [vmem:[%s2021_s18 + $0x171] sm:$0xff] %vm1279_vm2, %v1246_v23 }
 0x19e PF: > { %s17_s20 = sadd.s32 1, %s1623_s20   ;;  %s2291_s15 = smov %s1607_s16 }
 0x19f   : > { %p14_p9 = scmp.ge.s32.totalorder %s17_s20, 4   ;;  %s2292_s16 = smov %s1611_s17 }
 0x1a0   : > { %s2293_s17 = smov %s1705_s27  ;;  %s2294_s18 = smov %s1619_s19 }
 0x1a1   : > { %s2295_s19 = smov %s2297_s22  ;;  %16 = sbr.rel (!%p14_p9) target bundleno = 4 (0x4), region = 85 }
 0x1a8   :  { %1344 = vsyncpa [#allocation3], 1 }
 0x1a9   :  { %1346 = vsyncpa [#allocation3 + $0x1], 1 }

</bundles_post_ra>
